<compile_context>
chip_gen: v6e
topology: v6e:2x2x1
jax: 0.10.0
libtpu: 0.0.40
codegen_flags: <defaults>
</compile_context>

<pallas_src>
import functools
import math

import jax
import jax.numpy as jnp
from jax.experimental import pallas as pl
from jax.experimental.pallas import tpu as pltpu

_LANE = 128
_SUBLANE_F32 = 8
_TILE_TARGET_BYTES = 2 << 20  # ~2 MiB per input tile


def _round_up(x, m):
    return ((x + m - 1) // m) * m


def _norm_kernel(x_ref, alpha_ref, bias_ref, o_ref, *, eps, dim):
    # x_ref: (TR, D). Rows past the true row count (ragged last block) hold
    # unspecified data, but the reduction is per-row along lanes only, so those
    # rows never contaminate valid rows and their outputs are dropped by the
    # masked edge-block writeback.
    x = x_ref[...].astype(jnp.float32)                        # (TR, D)
    mean = jnp.sum(x, axis=-1, keepdims=True) * (1.0 / dim)   # (TR, 1)
    xc = x - mean                                             # (TR, D)
    # Two-pass unbiased variance (Bessel correction) to match torch.std.
    # Note: for dim == 1 this is 0/0 = nan, same as torch's unbiased std.
    var = jnp.sum(xc * xc, axis=-1, keepdims=True) / jnp.float32(dim - 1)
    std = jnp.sqrt(var)
    # Per-row reciprocal (only TR values); approx=False keeps exact parity
    # with the torch/JAX reference divide.
    inv = pl.reciprocal(std + eps, approx=False)              # (TR, 1)
    alpha = alpha_ref[...].astype(jnp.float32)                # (1, D)
    bias = bias_ref[...].astype(jnp.float32)                  # (1, D)
    o_ref[...] = (xc * (inv * alpha) + bias).astype(o_ref.dtype)


def _pick_row_tile(rows, d, itemsize):
    """Row tile targeting ~2 MiB per input tile, >=4 grid steps when possible."""
    # sublane packing: 8 rows per vreg for 32-bit, 16 for 16-bit, 32 for 8-bit
    sublane = _SUBLANE_F32 * max(1, 4 // itemsize)
    d_lanes = _round_up(d, _LANE)          # layout footprint of one row
    row_bytes = d_lanes * itemsize
    tr = (_TILE_TARGET_BYTES // max(row_bytes, 1)) // sublane * sublane
    tr = max(tr, sublane)
    # Keep >= 4 grid steps when rows allow: with ("parallel",) the row grid is
    # sharded across v7x's two TensorCores, and >=2 steps per core keeps each
    # core's DMA/compute pipeline double-buffered.
    if rows >= 4 * sublane:
        tr = min(tr, max(sublane, (rows // 4) // sublane * sublane))
    # Never exceed the (sublane-rounded) row count.
    tr = min(tr, _round_up(rows, sublane))
    return tr


def norm_forward(x, alpha, bias, eps=1e-6):
    """x: (..., D); alpha, bias: (D,). Returns same shape/dtype as x."""
    orig_shape = x.shape
    D = orig_shape[-1]
    rows = math.prod(orig_shape[:-1])  # == 1 for 1-D input
    x2 = x.reshape(rows, D)

    itemsize = jnp.dtype(x.dtype).itemsize
    tr = _pick_row_tile(rows, D, itemsize)
    grid = (pl.cdiv(rows, tr),)

    kernel = functools.partial(_norm_kernel, eps=float(eps), dim=D)

    out = pl.pallas_call(
        kernel,
        out_shape=jax.ShapeDtypeStruct((rows, D), x.dtype),
        grid_spec=pltpu.PrefetchScalarGridSpec(
            num_scalar_prefetch=0,
            grid=grid,
            in_specs=[
                # Last block dim uses the full array extent D (valid even when
                # D % 128 != 0); the row dim tiles with a masked edge block.
                pl.BlockSpec((tr, D), lambda i: (i, 0)),
                pl.BlockSpec((1, D), lambda i: (0, 0)),
                pl.BlockSpec((1, D), lambda i: (0, 0)),
            ],
            out_specs=pl.BlockSpec((tr, D), lambda i: (i, 0)),
        ),
        compiler_params=pltpu.CompilerParams(
            dimension_semantics=("parallel",),
            # Small fixed scoped-VMEM request: ~2 MiB tiles x double-buffered
            # in+out plus f32 temps fits easily; 32 MiB is safe on v5e/v6e/v7x.
            vmem_limit_bytes=32 << 20,
        ),
    )(x2, alpha.reshape(1, D), bias.reshape(1, D))

    return out.reshape(orig_shape)


if __name__ == "__main__":
    # small shapes consistent with a Transformer Norm: batch=2, seq=8, hidden=32
    B, S, D = 2, 8, 32
    key = jax.random.PRNGKey(0)
    x = jax.random.normal(key, (B, S, D), dtype=jnp.float32)

    # deterministic parameter init, as in the module's __init__
    alpha = jnp.ones((D,), dtype=jnp.float32)
    bias = jnp.zeros((D,), dtype=jnp.float32)

    out = norm_forward(x, alpha, bias, eps=1e-6)
    jax.block_until_ready(out)

    # reference check in plain JAX (unbiased std, eps added to std)
    mean = jnp.mean(x, axis=-1, keepdims=True)
    xc = x - mean
    std = jnp.sqrt(jnp.sum(xc * xc, axis=-1, keepdims=True) / (D - 1))
    ref = alpha * xc / (std + 1e-6) + bias
    assert jnp.allclose(out, ref, atol=1e-5, rtol=1e-5), "mismatch vs reference"

    print("KERNEL_OK")
</pallas_src>

<mosaic_0001>
module attributes {stable_mosaic.version = 11 : i64} {
  func.func @_norm_kernel(%arg0: i32, %arg1: memref<16x32xf32, #tpu.memory_space<vmem>>, %arg2: memref<1x32xf32, #tpu.memory_space<vmem>>, %arg3: memref<1x32xf32, #tpu.memory_space<vmem>>, %arg4: memref<16x32xf32, #tpu.memory_space<vmem>>) attributes {dimension_semantics = [#tpu.dimension_semantics<parallel>], iteration_bounds = array<i64: 1>, scalar_prefetch = 0 : i64, scratch_operands = 0 : i64, tpu.core_type = #tpu.core_type<tc>, window_params = [{transform_indices = @transform_0, window_bounds = array<i64: 16, 32>}, {pipeline_mode = #tpu.pipeline_mode<synchronous>, transform_indices = @transform_1, window_bounds = array<i64: 1, 32>}, {pipeline_mode = #tpu.pipeline_mode<synchronous>, transform_indices = @transform_2, window_bounds = array<i64: 1, 32>}, {transform_indices = @transform_3, window_bounds = array<i64: 16, 32>}]} {
    %c0 = arith.constant 0 : index
    %c0_0 = arith.constant 0 : index
    %0 = vector.load %arg1[%c0, %c0_0] : memref<16x32xf32, #tpu.memory_space<vmem>>, vector<16x32xf32>
    %cst = arith.constant dense<0.000000e+00> : vector<16xf32>
    %1 = vector.multi_reduction <add>, %0, %cst [1] : vector<16x32xf32> to vector<16xf32>
    %2 = vector.shape_cast %1 : vector<16xf32> to vector<16x1xf32>
    %cst_1 = arith.constant 3.125000e-02 : f32
    %3 = vector.broadcast %cst_1 : f32 to vector<16x1xf32>
    %4 = arith.mulf %2, %3 : vector<16x1xf32>
    %5 = vector.broadcast %4 : vector<16x1xf32> to vector<16x32xf32>
    %6 = arith.subf %0, %5 : vector<16x32xf32>
    %7 = arith.mulf %6, %6 : vector<16x32xf32>
    %cst_2 = arith.constant dense<0.000000e+00> : vector<16xf32>
    %8 = vector.multi_reduction <add>, %7, %cst_2 [1] : vector<16x32xf32> to vector<16xf32>
    %9 = vector.shape_cast %8 : vector<16xf32> to vector<16x1xf32>
    %cst_3 = arith.constant 3.100000e+01 : f32
    %10 = vector.broadcast %cst_3 : f32 to vector<16x1xf32>
    %11 = arith.divf %9, %10 : vector<16x1xf32>
    %12 = math.sqrt %11 : vector<16x1xf32>
    %cst_4 = arith.constant 9.99999997E-7 : f32
    %13 = vector.broadcast %cst_4 : f32 to vector<16x1xf32>
    %14 = arith.addf %12, %13 : vector<16x1xf32>
    %15 = tpu.reciprocal %14 : vector<16x1xf32> -> vector<16x1xf32>
    %c0_5 = arith.constant 0 : index
    %c0_6 = arith.constant 0 : index
    %16 = vector.load %arg2[%c0_5, %c0_6] : memref<1x32xf32, #tpu.memory_space<vmem>>, vector<1x32xf32>
    %c0_7 = arith.constant 0 : index
    %c0_8 = arith.constant 0 : index
    %17 = vector.load %arg3[%c0_7, %c0_8] : memref<1x32xf32, #tpu.memory_space<vmem>>, vector<1x32xf32>
    %18 = vector.broadcast %15 : vector<16x1xf32> to vector<16x32xf32>
    %19 = vector.broadcast %16 : vector<1x32xf32> to vector<16x32xf32>
    %20 = arith.mulf %18, %19 : vector<16x32xf32>
    %21 = arith.mulf %6, %20 : vector<16x32xf32>
    %22 = vector.broadcast %17 : vector<1x32xf32> to vector<16x32xf32>
    %23 = arith.addf %21, %22 : vector<16x32xf32>
    %c0_9 = arith.constant 0 : index
    %c0_10 = arith.constant 0 : index
    %24 = vector.load %arg4[%c0_9, %c0_10] : memref<16x32xf32, #tpu.memory_space<vmem>>, vector<16x32xf32>
    tpu.vector_store %arg4[%c0_9, %c0_10], %23 {strides = array<i32>} : memref<16x32xf32, #tpu.memory_space<vmem>>, vector<16x32xf32>,
    return
  }
  func.func @transform_0(%arg0: i32) -> (i32, i32) {
    %c0_i32 = arith.constant 0 : i32
    %c0_i32_0 = arith.constant 0 : i32
    return %arg0, %c0_i32 : i32, i32
  }
  func.func @transform_1(%arg0: i32) -> (i32, i32) {
    %c0_i32 = arith.constant 0 : i32
    %c0_i32_0 = arith.constant 0 : i32
    %c0_i32_1 = arith.constant 0 : i32
    return %c0_i32, %c0_i32_0 : i32, i32
  }
  func.func @transform_2(%arg0: i32) -> (i32, i32) {
    %c0_i32 = arith.constant 0 : i32
    %c0_i32_0 = arith.constant 0 : i32
    %c0_i32_1 = arith.constant 0 : i32
    return %c0_i32, %c0_i32_0 : i32, i32
  }
  func.func @transform_3(%arg0: i32) -> (i32, i32) {
    %c0_i32 = arith.constant 0 : i32
    %c0_i32_0 = arith.constant 0 : i32
    return %arg0, %c0_i32 : i32, i32
  }
}

</mosaic_0001>

<bundles_post_ra>
// kernel: tpu_custom_call.1
= control target key start
LH: loop header
LB: loop body
LE: loop exit
PB: predicated region body
PF: predicated region fallthrough
CT: control target
= control target key end

     0   :  { %8 = vsyncpa [#allocation3], 0  ;;  %s216_s0 = inlined_call_operand.hbm [shape: f32[16,32], index: 0, kind: input, shape index: {}]   ;;  %s217_s1 = inlined_call_operand.vmem [shape: f32[1,32], index: 1, kind: input, shape index: {}]   ;;  %s218_s2 = inlined_call_operand.vmem [shape: f32[1,32], index: 2, kind: input, shape index: {}]   ;;  %s219_s3 = inlined_call_operand.hbm [shape: f32[16,32], index: 3, kind: output, shape index: {}]  }
   0x1   :  { %9 = vsyncpa [#allocation4], 0  ;;  %s168_s12 = smov [#allocation2]  }
   0x2   :  { %s15_s13 = sshll.u32 %s168_s12, 4  ;;  %s16_s13 = int_to_ptr.vmem [resolvable:$true] %s15_s13 }
   0x3   :  { %s132_s14 = scalar_lea.vmem %s16_s13, 256  ;;  %p137_p1 = scmp.lt.s32.totalorder %s16_s13, %s16_s13 }
   0x4   :  { %p133_p0 = scmp.ne.s32.totalorder %s16_s13, %s132_s14  ;;  %p138_p2 = scmp.lt.s32.totalorder %s132_s14, %s132_s14 }
   0x6   :  { %p139_p3 = por %p138_p2, %p137_p1 }
   0x8   :  { %p140_p4 = pnand %p139_p3, %p133_p0 }
   0xa   :  { %143 = shalt.err (!%p140_p4)
}
   0xb   :  { %s169_s15 = smov 128   ;;  %s170_s16 = smov 8  }
   0xc   :  { %21 = dma.hbm_to_vmem [thread:$0]  %s216_s0, 256, %s16_s13, [#allocation3], %s169_s15, %s169_s15, %s170_s16  }
   0xd   :  { %164 = dma.done.wait [#allocation3], 256  }
   0xe   :  { %165 = vsyncadd [#allocation3], 4294967040  ;;  %vm31_vm0 = vcmask 261120   ;;  %v29_v0 = vld [vmem:[#allocation2] sm:$0xff]  ;;  %v30_v1 = vld [vmem:[#allocation2 + $0x8] sm:$0xff]  ;;  %s171_s22 = smov [#allocation5]  }
   0xf   :  { %v32_v2 = vsel %vm31_vm0, %v29_v0, 0.0  ;;  %v35_v3 = vsel %vm31_vm0, %v30_v1, 0.0  ;;  %v110_v30 = vld [vmem:[%s217_s1] ss:$0 sm:$0xff]  ;;  %s98_s23 = sshll.u32 %s171_s22, 4  ;;  %s99_s23 = int_to_ptr.vmem [resolvable:$true] %s98_s23 }
  0x10   :  { %33 = vadd.xlane.f32.xlu0 %v32_v2  ;;  %v111_v33 = vld [vmem:[%s218_s2] ss:$0 sm:$0xff]  ;;  %s144_s1 = scalar_lea.vmem %s99_s23, 256  ;;  %p149_p6 = scmp.lt.s32.totalorder %s99_s23, %s99_s23 }
  0x11   :  { %p145_p5 = scmp.ne.s32.totalorder %s99_s23, %s144_s1  ;;  %p150_p7 = scmp.lt.s32.totalorder %s144_s1, %s144_s1 }
  0x13   :  { %p151_p8 = por %p150_p7, %p149_p6 }
  0x14   :  { %36 = vadd.xlane.f32.xlu0 %v35_v3 }
  0x15   :  { %p152_p9 = pnand %p151_p8, %p145_p5 }
  0x99   :  { %v34_v4 = vpop.xlane.xlu0 %33 }
  0x9a   :  { %v38_v5 = vmul.f32 0.03125, %v34_v4 }
  0x9c   :  { %v40_v6 = vsub.f32 %v29_v0, %v38_v5 }
  0x9d   :  { %v37_v7 = vpop.xlane.xlu0 %36 }
  0x9e   :  { %v39_v8 = vmul.f32 0.03125, %v37_v7  ;;  %v42_v9 = vmul.f32 %v40_v6, %v40_v6 }
  0xa0   :  { %v41_v10 = vsub.f32 %v30_v1, %v39_v8  ;;  %v44_v11 = vsel %vm31_vm0, %v42_v9, 0.0 }
  0xa1   :  { %45 = vadd.xlane.f32.xlu1 %v44_v11 }
  0xa2   :  { %v43_v12 = vmul.f32 %v41_v10, %v41_v10 }
  0xa4   :  { %v47_v13 = vsel %vm31_vm0, %v43_v12, 0.0 }
  0xa5   :  { %48 = vadd.xlane.f32.xlu1 %v47_v13 }
 0x12a   :  { %v46_v14 = vpop.xlane.xlu1 %45 }
 0x12b   :  { %v51_v15 = vmul.f32 0.032258064, %v46_v14 }
 0x12d   :  { %116 = vrsqrt.f32 %v51_v15  ;;  %vm55_vm1 = vcmp.eq.f32.partialorder %v51_v15, inf  ;;  %v58_v20 = vand.u32 2147483648, %v51_v15  ;;  %vm57_vm2 = vcmp.eq.f32.partialorder %v51_v15, 0.0 }
 0x12e   :  { %v49_v16 = vpop.xlane.xlu1 %48 }
 0x12f   :  { %v52_v17 = vmul.f32 0.032258064, %v49_v16 }
 0x131   :  { %118 = vrsqrt.f32 %v52_v17  ;;  %vm62_vm3 = vcmp.eq.f32.partialorder %v52_v17, inf  ;;  %v65_v26 = vand.u32 2147483648, %v52_v17  ;;  %vm64_vm4 = vcmp.eq.f32.partialorder %v52_v17, 0.0 }
 0x13a   :  { %v117_v18 = vpop.eup %116 }
 0x13b   :  { %v54_v19 = vmul.f32 %v117_v18, %v51_v15 }
 0x13d   :  { %v56_v21 = vsel %vm55_vm1, %v51_v15, %v54_v19 }
 0x13e   :  { %v119_v22 = vpop.eup %118  ;;  %v59_v23 = vsel %vm57_vm2, %v58_v20, %v56_v21 }
 0x13f   :  { %v67_v24 = vadd.f32 1e-06, %v59_v23  ;;  %v61_v25 = vmul.f32 %v119_v22, %v52_v17 }
 0x141   :  { %120 = vrcp.f32 %v67_v24  ;;  %v63_v27 = vsel %vm62_vm3, %v52_v17, %v61_v25 }
 0x142   :  { %v66_v28 = vsel %vm64_vm4, %v65_v26, %v63_v27 }
 0x143   :  { %v68_v29 = vadd.f32 1e-06, %v66_v28 }
 0x145   :  { %122 = vrcp.f32 %v68_v29 }
 0x14e   :  { %v121_v31 = vpop.eup %120 }
 0x14f   :  { %v79_v32 = vmul.f32 %v121_v31, %v110_v30 }
 0x151   :  { %v81_v34 = vmul.f32 %v79_v32, %v40_v6 }
 0x152   :  { %v123_v35 = vpop.eup %122 }
 0x153   :  { %v80_v36 = vmul.f32 %v123_v35, %v110_v30  ;;  %v89_v37 = vadd.f32 %v111_v33, %v81_v34 }
 0x155   :  { %v82_v38 = vmul.f32 %v80_v36, %v41_v10  ;;  %91 = vst.msk [vmem:[#allocation5] sm:$0xff] %vm31_vm0, %v89_v37 }
 0x157   :  { %v90_v39 = vadd.f32 %v111_v33, %v82_v38 }
 0x159   :  { %92 = vst.msk [vmem:[#allocation5 + $0x8] sm:$0xff] %vm31_vm0, %v90_v39 }
 0x15a   :  { %155 = shalt.err (!%p152_p9)
}
 0x15b   :  { %104 = dma.vmem_to_hbm [thread:$0]  %s99_s23, 256, %s219_s3, [#allocation4], %s169_s15, %s169_s15, %s170_s16  }
 0x15c   :  { %166 = dma.done.wait [#allocation4], 256  }
 0x15d   :  { %167 = vsyncadd [#allocation4], 4294967040 }
 0x15e   :  { %108 = vsyncpa [#allocation3], 1 }
 0x15f   :  { %109 = vsyncpa [#allocation4], 1 }

</bundles_post_ra>
